<compile_context>
chip_gen: v5e
topology: v5e:2x2
jax: 0.10.0
libtpu: 0.0.40
codegen_flags: <defaults>
</compile_context>

<pallas_src>
import math

import jax
import jax.numpy as jnp
from jax.experimental import pallas as pl
from jax.experimental.pallas import tpu as pltpu

# Hyperparameters from GaussianMMLoss.__init__ (module has no learned weights).
EPS = 1e-6
BG_WEIGHT = 1.0
GMM_WEIGHT = 1.0
MIN_SIGMA = 0.01
MAX_SIGMA = 10.0
USE_LOG_SIGMA = True
LOG_2PI = math.log(2.0 * math.pi)

_LANE = 128          # lane width: spatial tile must be a multiple of this
_MAX_TILE = 32768    # HBM-bound kernel: big tiles amortize grid-step overhead


def _round_up(x, m):
    return (x + m - 1) // m * m


def _cdiv(a, b):
    return -(-a // b)


def _make_kernel(tile, hw, needs_mask, packed_target, write_maps):
    """Build the per-(batch, spatial-tile) kernel.

    Refs (batch dim squeezed):
      out_ref                         : (10, tile)
      tgt_ref                         : (10, tile) or (6, tile) if packed
      [total_ref, gmm_ref, bgl_ref]   : (1, tile)   (only if write_maps)
      sums_ref                        : (1, 1, 3) in SMEM (partial sums)
    """

    def kernel(out_ref, tgt_ref, *refs):
        if write_maps:
            total_ref, gmm_ref, bgl_ref, sums_ref = refs
        else:
            (sums_ref,) = refs

        # ---- prediction channels: static ref slices (only used sublanes) ----
        p = out_ref[0:1, :].astype(jnp.float32)
        pxyz_mu = out_ref[1:5, :].astype(jnp.float32)
        pxyz_sig_raw = out_ref[5:9, :].astype(jnp.float32)
        bg = out_ref[9:10, :].astype(jnp.float32)

        # ---- target channels (prediction-sigma targets are never read) ----
        target_p = tgt_ref[0:1, :].astype(jnp.float32)
        target_pxyz_mu = tgt_ref[1:5, :].astype(jnp.float32)
        if packed_target:
            target_bg = tgt_ref[5:6, :].astype(jnp.float32)
        else:
            # NOTE: channels 5:9 still ride along in the block DMA because a
            # sublane-sliced BlockSpec on a 10-channel array violates the
            # (8,128) block constraint; pass a packed 6-channel target to
            # eliminate that traffic (see gaussian_mm_loss docstring).
            target_bg = tgt_ref[9:10, :].astype(jnp.float32)

        # ---- _parse_output(output): sigma ----
        if USE_LOG_SIGMA:
            pxyz_sig = jnp.exp(pxyz_sig_raw)
        else:
            pxyz_sig = jax.nn.softplus(pxyz_sig_raw) + MIN_SIGMA
        pxyz_sig = jnp.clip(pxyz_sig, MIN_SIGMA, MAX_SIGMA)

        # ---- detection BCE (matches torch F.binary_cross_entropy -100 clamp) ----
        fg_mask = (target_p > 0.5).astype(jnp.float32)
        p_sigmoid = jax.nn.sigmoid(p)
        log_p = jnp.maximum(jnp.log(p_sigmoid), -100.0)
        log_1mp = jnp.maximum(jnp.log(1.0 - p_sigmoid), -100.0)
        detection_loss = -(target_p * log_p + (1.0 - target_p) * log_1mp)

        # ---- gaussian NLL.  The torch `if fg_mask.sum() > 0` guard is a
        # semantic no-op: sigma is clamped so nll is finite, and the term is
        # multiplied by the (possibly all-zero) mask. ----
        sig_eps = pxyz_sig + EPS
        normalized_diff = (pxyz_mu - target_pxyz_mu) / sig_eps
        nll = jnp.sum(0.5 * normalized_diff * normalized_diff + jnp.log(sig_eps),
                      axis=0, keepdims=True)
        nll = nll + 4.0 * (0.5 * LOG_2PI)   # constant added once, not per channel
        gmm_loss = detection_loss + nll * fg_mask

        # ---- background MSE (reduction='none') ----
        bg_diff = bg - target_bg
        bg_loss = bg_diff * bg_diff

        if write_maps:
            if GMM_WEIGHT == 1.0 and BG_WEIGHT == 1.0:
                total_loss = gmm_loss + bg_loss
            else:
                total_loss = GMM_WEIGHT * gmm_loss + BG_WEIGHT * bg_loss
            total_ref[...] = total_loss.astype(total_ref.dtype)
            gmm_ref[...] = gmm_loss.astype(gmm_ref.dtype)
            bgl_ref[...] = bg_loss.astype(bgl_ref.dtype)

        # ---- fused partial sums for the mean losses ----
        def _write_sums(gmm_s, bg_s):
            sg = jnp.sum(gmm_s)
            sb = jnp.sum(bg_s)
            sums_ref[0, 0, 1] = sg
            sums_ref[0, 0, 2] = sb
            # total = weighted combination of the other two (saves one full
            # cross-lane reduction per step).
            sums_ref[0, 0, 0] = GMM_WEIGHT * sg + BG_WEIGHT * sb

        if needs_mask:
            t = pl.program_id(1)
            last = pl.num_programs(1) - 1

            @pl.when(t == last)
            def _():
                lane = jax.lax.broadcasted_iota(jnp.int32, (1, tile), 1)
                valid = (t * tile + lane) < hw
                # jnp.where does not propagate NaN/inf from padded lanes.
                _write_sums(jnp.where(valid, gmm_loss, 0.0),
                            jnp.where(valid, bg_loss, 0.0))

            @pl.when(t != last)
            def _():
                _write_sums(gmm_loss, bg_loss)
        else:
            _write_sums(gmm_loss, bg_loss)

    return kernel


def gaussian_mm_loss(output, target, *, max_tile=_MAX_TILE,
                     return_maps=True, map_dtype=jnp.float32):
    """Forward pass of GaussianMMLoss (dense-target path).

    output: (B, 10, H, W) predictions (NCHW, as in PyTorch).
    target: (B, 10, H, W) dense target, OR a packed (B, 6, H, W) target
            holding channels (p, mu_x4, bg) — the 4 sigma target channels are
            never read by the loss, so upstream target builders should emit
            the packed form to cut ~17% of HBM traffic.
    return_maps: when False only the mean losses are produced (skips the three
            full-resolution map writes — pure write-traffic savings).
    Returns the same dict as the torch module (maps omitted when
    return_maps=False).
    """
    B, C, H, W = output.shape
    if C != 10:
        raise ValueError("GaussianMMLoss expects 10-channel input")
    Ct = target.shape[1]
    if Ct not in (10, 6):
        raise ValueError("target must have 10 channels (p,mu4,sig4,bg) or a "
                         "packed 6 channels (p,mu4,bg)")
    packed_target = (Ct == 6)
    HW = H * W

    # Free (metadata-only) reshape; no dtype cast — kernel upcasts in VMEM.
    out3 = output.reshape(B, C, HW)
    tgt3 = target.reshape(B, Ct, HW)

    tile = min(_round_up(HW, _LANE), _round_up(max_tile, _LANE))
    # Megacore occupancy (v7x has 2 TCs): with B == 1 keep >= 2 grid steps.
    if B == 1 and HW > 2 * _LANE:
        tile = min(tile, _round_up(_cdiv(HW, 2), _LANE))
    n_tiles = _cdiv(HW, tile)
    needs_mask = (n_tiles * tile) != HW

    out_spec = pl.BlockSpec((None, C, tile), lambda b, t: (b, 0, t))
    tgt_spec = pl.BlockSpec((None, Ct, tile), lambda b, t: (b, 0, t))
    map_spec = pl.BlockSpec((None, 1, tile), lambda b, t: (b, 0, t))
    sum_spec = pl.BlockSpec((1, 1, 3), lambda b, t: (b, t, 0),
                            memory_space=pltpu.MemorySpace.SMEM)

    sums_shape = jax.ShapeDtypeStruct((B, n_tiles, 3), jnp.float32)
    map_itemsize = jnp.dtype(map_dtype).itemsize
    if return_maps:
        map_shape = jax.ShapeDtypeStruct((B, 1, HW), map_dtype)
        out_shapes = (map_shape, map_shape, map_shape, sums_shape)
        out_specs = [map_spec, map_spec, map_spec, sum_spec]
    else:
        out_shapes = (sums_shape,)
        out_specs = [sum_spec]

    elems = B * HW
    in_bytes = B * HW * (C * output.dtype.itemsize + Ct * target.dtype.itemsize)
    out_bytes = (3 * elems * map_itemsize if return_maps else 0) + B * n_tiles * 3 * 4
    cost = pl.CostEstimate(
        flops=int(34 * elems),
        transcendentals=int(11 * elems),
        bytes_accessed=int(in_bytes + out_bytes),
    )

    # Double-buffered in/out blocks + headroom for the f32 upcast temporaries;
    # set explicitly so v5e's 16 MiB scoped-VMEM default never limits the tile.
    step_bytes = tile * (C * output.dtype.itemsize
                         + Ct * target.dtype.itemsize
                         + (3 * map_itemsize if return_maps else 0))
    vmem_limit = int(min(64 << 20, max(32 << 20, 4 * step_bytes)))

    results = pl.pallas_call(
        _make_kernel(tile, HW, needs_mask, packed_target, return_maps),
        out_shape=out_shapes,
        grid_spec=pltpu.PrefetchScalarGridSpec(
            num_scalar_prefetch=0,
            grid=(B, n_tiles),
            in_specs=[out_spec, tgt_spec],
            out_specs=out_specs,
        ),
        compiler_params=pltpu.CompilerParams(
            dimension_semantics=("parallel", "parallel"),
            vmem_limit_bytes=vmem_limit),
        cost_estimate=cost,
    )(out3, tgt3)

    if return_maps:
        total, gmm, bgl, psums = results
    else:
        (psums,) = results

    sums = jnp.sum(psums, axis=(0, 1))          # (3,) tiny reduction
    denom = jnp.float32(B * HW)
    result = {
        "mean_total_loss": sums[0] / denom,
        "mean_gmm_loss": sums[1] / denom,
        "mean_bg_loss": sums[2] / denom,
    }
    if return_maps:
        result["total_loss"] = total.reshape(B, 1, H, W)
        result["gmm_loss"] = gmm.reshape(B, 1, H, W)
        result["bg_loss"] = bgl.reshape(B, 1, H, W)
    return result


def _reference(output, target):
    """Pure-JAX reference mirroring the torch forward (sanity check)."""
    output = output.astype(jnp.float32)
    target = target.astype(jnp.float32)
    p = output[:, 0:1]
    mu = output[:, 1:5]
    sig = jnp.clip(jnp.exp(output[:, 5:9]), MIN_SIGMA, MAX_SIGMA)
    bg = output[:, 9:10]
    tp = target[:, 0:1]
    tmu = target[:, 1:5]
    tbg = target[:, 9:10]

    fg = (tp > 0.5).astype(jnp.float32)
    ps = jax.nn.sigmoid(p)
    det = -(tp * jnp.maximum(jnp.log(ps), -100.0)
            + (1.0 - tp) * jnp.maximum(jnp.log(1.0 - ps), -100.0))
    nd = (mu - tmu) / (sig + EPS)
    nll = jnp.sum(0.5 * nd * nd + jnp.log(sig + EPS) + 0.5 * LOG_2PI,
                  axis=1, keepdims=True)
    gmm = det + nll * fg
    bgl = (bg - tbg) ** 2
    return GMM_WEIGHT * gmm + BG_WEIGHT * bgl


def _make_inputs(key, B, C, H, W):
    k_out, k_tgt, k_p = jax.random.split(key, 3)
    output = jax.random.normal(k_out, (B, C, H, W), dtype=jnp.float32)
    # Realistic 10-channel target: binary detection map in ch0, random params
    # in ch1-8, background in ch9.
    target = jax.random.normal(k_tgt, (B, C, H, W), dtype=jnp.float32) * 0.5
    det_map = (jax.random.uniform(k_p, (B, 1, H, W)) > 0.9).astype(jnp.float32)
    target = target.at[:, 0:1].set(det_map)
    return output, target


def _pack_target(target):
    """(B,10,H,W) -> packed (B,6,H,W): (p, mu_x4, bg); sigma channels dropped."""
    return jnp.concatenate([target[:, 0:5], target[:, 9:10]], axis=1)


if __name__ == "__main__":
    B, C = 2, 10
    key = jax.random.PRNGKey(0)
    k1, k2, k3 = jax.random.split(key, 3)

    # --- case 1: single tile per batch (H*W = 256), full-map output ---
    output, target = _make_inputs(k1, B, C, 16, 16)
    result = gaussian_mm_loss(output, target)
    jax.block_until_ready(result)

    ref_total = _reference(output, target)
    assert result["total_loss"].shape == (B, 1, 16, 16)
    assert jnp.allclose(result["total_loss"], ref_total, atol=1e-4, rtol=1e-4)
    assert jnp.allclose(result["mean_total_loss"], jnp.mean(ref_total),
                        atol=1e-4, rtol=1e-3)
    assert jnp.allclose(result["total_loss"],
                        GMM_WEIGHT * result["gmm_loss"]
                        + BG_WEIGHT * result["bg_loss"],
                        atol=1e-5, rtol=1e-5)

    # --- case 2: multiple spatial tiles + ragged last tile (mask path) ---
    output2, target2 = _make_inputs(k2, B, C, 32, 32)   # HW = 1024
    result2 = gaussian_mm_loss(output2, target2, max_tile=384)  # 3 tiles, ragged
    jax.block_until_ready(result2)

    ref_total2 = _reference(output2, target2)
    assert jnp.allclose(result2["total_loss"], ref_total2, atol=1e-4, rtol=1e-4)
    assert jnp.allclose(result2["mean_total_loss"], jnp.mean(ref_total2),
                        atol=1e-4, rtol=1e-3)

    # --- case 3: B == 1 megacore split (>= 2 spatial tiles, no mask) ---
    output3, target3 = _make_inputs(k3, 1, C, 32, 32)   # HW = 1024 -> 2 tiles
    result3 = gaussian_mm_loss(output3, target3)
    jax.block_until_ready(result3)

    ref_total3 = _reference(output3, target3)
    assert jnp.allclose(result3["total_loss"], ref_total3, atol=1e-4, rtol=1e-4)
    assert jnp.allclose(result3["mean_total_loss"], jnp.mean(ref_total3),
                        atol=1e-4, rtol=1e-3)

    # --- case 4: bf16 inputs + packed 6-channel target + means-only path ---
    output4 = output2.astype(jnp.bfloat16)
    target4_full = target2.astype(jnp.bfloat16)
    target4_packed = _pack_target(target4_full)
    result4 = gaussian_mm_loss(output4, target4_packed, return_maps=False)
    jax.block_until_ready(result4)

    ref_total4 = _reference(output4, target4_full)   # f32 math on bf16 values
    assert "total_loss" not in result4
    assert jnp.allclose(result4["mean_total_loss"], jnp.mean(ref_total4),
                        atol=1e-3, rtol=1e-3)
    assert jnp.allclose(result4["mean_bg_loss"],
                        jnp.mean((output4[:, 9:10].astype(jnp.float32)
                                  - target4_full[:, 9:10].astype(jnp.float32)) ** 2),
                        atol=1e-3, rtol=1e-3)

    # TODO(synk): the `_build_target_from_emitters` scatter path (building a
    # dense target from emitter lists) and `compute_likelihood` (per-emitter
    # gather) are data-dependent scatter/gather and are left to plain JAX glue;
    # the kernel implements the dense-target forward (and accepts a packed
    # 6-channel target so that builder can skip the never-read sigma channels).
    print("KERNEL_OK")
</pallas_src>

<mosaic_0001>
module attributes {stable_mosaic.version = 11 : i64} {
  func.func @kernel(%arg0: i32, %arg1: i32, %arg2: memref<1x10x256xf32, #tpu.memory_space<vmem>>, %arg3: memref<1x10x256xf32, #tpu.memory_space<vmem>>, %arg4: memref<1x1x256xf32, #tpu.memory_space<vmem>>, %arg5: memref<1x1x256xf32, #tpu.memory_space<vmem>>, %arg6: memref<1x1x256xf32, #tpu.memory_space<vmem>>, %arg7: memref<1x1x3xf32, #tpu.memory_space<smem>>) attributes {dimension_semantics = [#tpu.dimension_semantics<parallel>, #tpu.dimension_semantics<parallel>], iteration_bounds = array<i64: 2, 1>, scalar_prefetch = 0 : i64, scratch_operands = 0 : i64, tpu.core_type = #tpu.core_type<tc>, window_params = [{transform_indices = @transform_0, window_bounds = array<i64: 1, 10, 256>}, {transform_indices = @transform_1, window_bounds = array<i64: 1, 10, 256>}, {transform_indices = @transform_2, window_bounds = array<i64: 1, 1, 256>}, {transform_indices = @transform_3, window_bounds = array<i64: 1, 1, 256>}, {transform_indices = @transform_4, window_bounds = array<i64: 1, 1, 256>}, {transform_indices = @transform_5, window_bounds = array<i64: 1, 1, 3>}]} {
    %c0 = arith.constant 0 : index
    %c0_0 = arith.constant 0 : index
    %c0_1 = arith.constant 0 : index
    %0 = vector.load %arg2[%c0, %c0_0, %c0_1] : memref<1x10x256xf32, #tpu.memory_space<vmem>>, vector<1x1x256xf32>
    %1 = vector.shape_cast %0 : vector<1x1x256xf32> to vector<1x256xf32>
    %c0_2 = arith.constant 0 : index
    %c1 = arith.constant 1 : index
    %c0_3 = arith.constant 0 : index
    %2 = vector.load %arg2[%c0_2, %c1, %c0_3] : memref<1x10x256xf32, #tpu.memory_space<vmem>>, vector<1x4x256xf32>
    %3 = vector.shape_cast %2 : vector<1x4x256xf32> to vector<4x256xf32>
    %c0_4 = arith.constant 0 : index
    %c5 = arith.constant 5 : index
    %c0_5 = arith.constant 0 : index
    %4 = vector.load %arg2[%c0_4, %c5, %c0_5] : memref<1x10x256xf32, #tpu.memory_space<vmem>>, vector<1x4x256xf32>
    %5 = vector.shape_cast %4 : vector<1x4x256xf32> to vector<4x256xf32>
    %c0_6 = arith.constant 0 : index
    %c9 = arith.constant 9 : index
    %c0_7 = arith.constant 0 : index
    %6 = vector.load %arg2[%c0_6, %c9, %c0_7] : memref<1x10x256xf32, #tpu.memory_space<vmem>>, vector<1x1x256xf32>
    %7 = vector.shape_cast %6 : vector<1x1x256xf32> to vector<1x256xf32>
    %c0_8 = arith.constant 0 : index
    %c0_9 = arith.constant 0 : index
    %c0_10 = arith.constant 0 : index
    %8 = vector.load %arg3[%c0_8, %c0_9, %c0_10] : memref<1x10x256xf32, #tpu.memory_space<vmem>>, vector<1x1x256xf32>
    %9 = vector.shape_cast %8 : vector<1x1x256xf32> to vector<1x256xf32>
    %c0_11 = arith.constant 0 : index
    %c1_12 = arith.constant 1 : index
    %c0_13 = arith.constant 0 : index
    %10 = vector.load %arg3[%c0_11, %c1_12, %c0_13] : memref<1x10x256xf32, #tpu.memory_space<vmem>>, vector<1x4x256xf32>
    %11 = vector.shape_cast %10 : vector<1x4x256xf32> to vector<4x256xf32>
    %c0_14 = arith.constant 0 : index
    %c9_15 = arith.constant 9 : index
    %c0_16 = arith.constant 0 : index
    %12 = vector.load %arg3[%c0_14, %c9_15, %c0_16] : memref<1x10x256xf32, #tpu.memory_space<vmem>>, vector<1x1x256xf32>
    %13 = vector.shape_cast %12 : vector<1x1x256xf32> to vector<1x256xf32>
    %14 = math.exp %5 : vector<4x256xf32>
    %cst = arith.constant 0.00999999977 : f32
    %cst_17 = arith.constant 1.000000e+01 : f32
    %15 = vector.broadcast %cst : f32 to vector<4x256xf32>
    %16 = arith.maximumf %15, %14 : vector<4x256xf32>
    %17 = vector.broadcast %cst_17 : f32 to vector<4x256xf32>
    %18 = arith.minimumf %17, %16 : vector<4x256xf32>
    %cst_18 = arith.constant 5.000000e-01 : f32
    %19 = vector.broadcast %cst_18 : f32 to vector<1x256xf32>
    %20 = arith.cmpf ogt, %9, %19 : vector<1x256xf32>
    %21 = arith.extui %20 : vector<1x256xi1> to vector<1x256xi32>
    %22 = arith.sitofp %21 : vector<1x256xi32> to vector<1x256xf32>
    %23 = arith.negf %1 : vector<1x256xf32>
    %24 = math.exp %23 : vector<1x256xf32>
    %cst_19 = arith.constant 1.000000e+00 : f32
    %25 = vector.broadcast %cst_19 : f32 to vector<1x256xf32>
    %26 = arith.addf %25, %24 : vector<1x256xf32>
    %27 = arith.divf %25, %26 : vector<1x256xf32>
    %28 = math.log %27 : vector<1x256xf32>
    %cst_20 = arith.constant -1.000000e+02 : f32
    %29 = vector.broadcast %cst_20 : f32 to vector<1x256xf32>
    %30 = arith.maximumf %28, %29 : vector<1x256xf32>
    %cst_21 = arith.constant 1.000000e+00 : f32
    %31 = vector.broadcast %cst_21 : f32 to vector<1x256xf32>
    %32 = arith.subf %31, %27 : vector<1x256xf32>
    %33 = math.log %32 : vector<1x256xf32>
    %cst_22 = arith.constant -1.000000e+02 : f32
    %34 = vector.broadcast %cst_22 : f32 to vector<1x256xf32>
    %35 = arith.maximumf %33, %34 : vector<1x256xf32>
    %36 = arith.mulf %9, %30 : vector<1x256xf32>
    %cst_23 = arith.constant 1.000000e+00 : f32
    %37 = vector.broadcast %cst_23 : f32 to vector<1x256xf32>
    %38 = arith.subf %37, %9 : vector<1x256xf32>
    %39 = arith.mulf %38, %35 : vector<1x256xf32>
    %40 = arith.addf %36, %39 : vector<1x256xf32>
    %cst_24 = arith.constant 0.000000e+00 : f32
    %41 = vector.broadcast %cst_24 : f32 to vector<1x256xf32>
    %42 = arith.subf %41, %40 : vector<1x256xf32>
    %cst_25 = arith.constant 9.99999997E-7 : f32
    %43 = vector.broadcast %cst_25 : f32 to vector<4x256xf32>
    %44 = arith.addf %18, %43 : vector<4x256xf32>
    %45 = arith.subf %3, %11 : vector<4x256xf32>
    %46 = arith.divf %45, %44 : vector<4x256xf32>
    %cst_26 = arith.constant 5.000000e-01 : f32
    %47 = vector.broadcast %cst_26 : f32 to vector<4x256xf32>
    %48 = arith.mulf %47, %46 : vector<4x256xf32>
    %49 = arith.mulf %48, %46 : vector<4x256xf32>
    %50 = math.log %44 : vector<4x256xf32>
    %51 = arith.addf %49, %50 : vector<4x256xf32>
    %cst_27 = arith.constant dense<0.000000e+00> : vector<256xf32>
    %52 = vector.multi_reduction <add>, %51, %cst_27 [0] : vector<4x256xf32> to vector<256xf32>
    %53 = vector.shape_cast %52 : vector<256xf32> to vector<1x256xf32>
    %cst_28 = arith.constant 3.67575407 : f32
    %54 = vector.broadcast %cst_28 : f32 to vector<1x256xf32>
    %55 = arith.addf %53, %54 : vector<1x256xf32>
    %56 = arith.mulf %55, %22 : vector<1x256xf32>
    %57 = arith.addf %42, %56 : vector<1x256xf32>
    %58 = arith.subf %7, %13 : vector<1x256xf32>
    %59 = arith.mulf %58, %58 : vector<1x256xf32>
    %60 = arith.addf %57, %59 : vector<1x256xf32>
    %c0_29 = arith.constant 0 : index
    %c0_30 = arith.constant 0 : index
    %c0_31 = arith.constant 0 : index
    %61 = vector.load %arg4[%c0_29, %c0_30, %c0_31] : memref<1x1x256xf32, #tpu.memory_space<vmem>>, vector<1x1x256xf32>
    %62 = vector.shape_cast %61 : vector<1x1x256xf32> to vector<1x256xf32>
    %63 = vector.shape_cast %60 : vector<1x256xf32> to vector<1x1x256xf32>
    tpu.vector_store %arg4[%c0_29, %c0_30, %c0_31], %63 {strides = array<i32>} : memref<1x1x256xf32, #tpu.memory_space<vmem>>, vector<1x1x256xf32>,
    %c0_32 = arith.constant 0 : index
    %c0_33 = arith.constant 0 : index
    %c0_34 = arith.constant 0 : index
    %64 = vector.load %arg5[%c0_32, %c0_33, %c0_34] : memref<1x1x256xf32, #tpu.memory_space<vmem>>, vector<1x1x256xf32>
    %65 = vector.shape_cast %64 : vector<1x1x256xf32> to vector<1x256xf32>
    %66 = vector.shape_cast %57 : vector<1x256xf32> to vector<1x1x256xf32>
    tpu.vector_store %arg5[%c0_32, %c0_33, %c0_34], %66 {strides = array<i32>} : memref<1x1x256xf32, #tpu.memory_space<vmem>>, vector<1x1x256xf32>,
    %c0_35 = arith.constant 0 : index
    %c0_36 = arith.constant 0 : index
    %c0_37 = arith.constant 0 : index
    %67 = vector.load %arg6[%c0_35, %c0_36, %c0_37] : memref<1x1x256xf32, #tpu.memory_space<vmem>>, vector<1x1x256xf32>
    %68 = vector.shape_cast %67 : vector<1x1x256xf32> to vector<1x256xf32>
    %69 = vector.shape_cast %59 : vector<1x256xf32> to vector<1x1x256xf32>
    tpu.vector_store %arg6[%c0_35, %c0_36, %c0_37], %69 {strides = array<i32>} : memref<1x1x256xf32, #tpu.memory_space<vmem>>, vector<1x1x256xf32>,
    %70 = vector.shape_cast %57 : vector<1x256xf32> to vector<1x1x256xf32>
    %cst_38 = arith.constant dense<0.000000e+00> : vector<1xf32>
    %71 = vector.multi_reduction <add>, %70, %cst_38 [1, 2] : vector<1x1x256xf32> to vector<1xf32>
    %72 = vector.shape_cast %71 : vector<1xf32> to vector<1x1x1xf32>
    %73 = vector.extract %72[0, 0, 0] : f32 from vector<1x1x1xf32>
    %74 = vector.shape_cast %59 : vector<1x256xf32> to vector<1x1x256xf32>
    %cst_39 = arith.constant dense<0.000000e+00> : vector<1xf32>
    %75 = vector.multi_reduction <add>, %74, %cst_39 [1, 2] : vector<1x1x256xf32> to vector<1xf32>
    %76 = vector.shape_cast %75 : vector<1xf32> to vector<1x1x1xf32>
    %77 = vector.extract %76[0, 0, 0] : f32 from vector<1x1x1xf32>
    %c0_40 = arith.constant 0 : index
    %c0_41 = arith.constant 0 : index
    %c1_42 = arith.constant 1 : index
    %78 = memref.load %arg7[%c0_40, %c0_41, %c1_42] : memref<1x1x3xf32, #tpu.memory_space<smem>>
    memref.store %73, %arg7[%c0_40, %c0_41, %c1_42] : memref<1x1x3xf32, #tpu.memory_space<smem>>
    %c0_43 = arith.constant 0 : index
    %c0_44 = arith.constant 0 : index
    %c2 = arith.constant 2 : index
    %79 = memref.load %arg7[%c0_43, %c0_44, %c2] : memref<1x1x3xf32, #tpu.memory_space<smem>>
    memref.store %77, %arg7[%c0_43, %c0_44, %c2] : memref<1x1x3xf32, #tpu.memory_space<smem>>
    %cst_45 = arith.constant 1.000000e+00 : f32
    %80 = arith.mulf %cst_45, %73 : f32
    %cst_46 = arith.constant 1.000000e+00 : f32
    %81 = arith.mulf %cst_46, %77 : f32
    %82 = arith.addf %80, %81 : f32
    %c0_47 = arith.constant 0 : index
    %c0_48 = arith.constant 0 : index
    %c0_49 = arith.constant 0 : index
    %83 = memref.load %arg7[%c0_47, %c0_48, %c0_49] : memref<1x1x3xf32, #tpu.memory_space<smem>>
    memref.store %82, %arg7[%c0_47, %c0_48, %c0_49] : memref<1x1x3xf32, #tpu.memory_space<smem>>
    return
  }
  func.func @transform_0(%arg0: i32, %arg1: i32) -> (i32, i32, i32) {
    %c0_i32 = arith.constant 0 : i32
    %c0_i32_0 = arith.constant 0 : i32
    return %arg0, %c0_i32, %arg1 : i32, i32, i32
  }
  func.func @transform_1(%arg0: i32, %arg1: i32) -> (i32, i32, i32) {
    %c0_i32 = arith.constant 0 : i32
    %c0_i32_0 = arith.constant 0 : i32
    return %arg0, %c0_i32, %arg1 : i32, i32, i32
  }
  func.func @transform_2(%arg0: i32, %arg1: i32) -> (i32, i32, i32) {
    %c0_i32 = arith.constant 0 : i32
    %c0_i32_0 = arith.constant 0 : i32
    return %arg0, %c0_i32, %arg1 : i32, i32, i32
  }
  func.func @transform_3(%arg0: i32, %arg1: i32) -> (i32, i32, i32) {
    %c0_i32 = arith.constant 0 : i32
    %c0_i32_0 = arith.constant 0 : i32
    return %arg0, %c0_i32, %arg1 : i32, i32, i32
  }
  func.func @transform_4(%arg0: i32, %arg1: i32) -> (i32, i32, i32) {
    %c0_i32 = arith.constant 0 : i32
    %c0_i32_0 = arith.constant 0 : i32
    return %arg0, %c0_i32, %arg1 : i32, i32, i32
  }
  func.func @transform_5(%arg0: i32, %arg1: i32) -> (i32, i32, i32) {
    %c0_i32 = arith.constant 0 : i32
    %c0_i32_0 = arith.constant 0 : i32
    return %arg0, %arg1, %c0_i32 : i32, i32, i32
  }
}

</mosaic_0001>

<bundles_post_ra>
// kernel: tpu_custom_call.1
= control target key start
LH: loop header
LB: loop body
LE: loop exit
PB: predicated region body
PF: predicated region fallthrough
CT: control target
= control target key end

     0   :  { %s1410_s0 = inlined_call_operand.vmem [shape: f32[2,10,256], index: 0, kind: input, shape index: {}]   ;;  %s1411_s1 = inlined_call_operand.vmem [shape: f32[2,10,256], index: 1, kind: input, shape index: {}]   ;;  %s1412_s2 = inlined_call_operand.hbm [shape: f32[2,1,256], index: 2, kind: output, shape index: {0}]   ;;  %s1413_s3 = inlined_call_operand.hbm [shape: f32[2,1,256], index: 3, kind: output, shape index: {1}]   ;;  %s1414_s4 = inlined_call_operand.hbm [shape: f32[2,1,256], index: 4, kind: output, shape index: {2}]   ;;  %s1415_s5 = inlined_call_operand.hbm [shape: f32[2,1,3], index: 5, kind: output, shape index: {3}]  }
   0x1   :  { %1421 = sst [smem:[#allocation14_spill]] %s1410_s0 }
   0x2   :  { %1422 = sst [smem:[#allocation15_spill]] %s1411_s1 }
   0x3   :  { %11 = vsyncpa [#allocation3], 0 }
   0x4   :  { %13 = vsyncpa [#allocation3 + $0x1], 0 }
   0x5   :  { %14 = vsyncpa [#allocation6], 0 }
   0x6   :  { %16 = vsyncpa [#allocation6 + $0x1], 0 }
   0x7   :  { %17 = vsyncpa [#allocation4], 0 }
   0x8   :  { %19 = vsyncpa [#allocation4 + $0x1], 0  ;;  %s1129_s18 = smov 0   ;;  %s1131_s19 = smov 0  }
   0x9   :  { %s1133_s20 = smov 0   ;;  %s1135_s21 = smov 0  }
   0xa   :  { %s1137_s22 = smov 0   ;;  %s1139_s23 = smov 0  }
   0xb LB: > { %s823_s24 = sadd.s32 4294967295, %s1096_s23   ;;  %s1416_s25 = sadd.s32 4294967294, %s1096_s23   ;;  %s1096_s23 = sphi %s1139_s23, %s25_s23   ;;  %s1092_s22 = sphi %s1137_s22, %s1448_s22   ;;  %s1088_s21 = sphi %s1135_s21, %s1447_s21   ;;  %s1084_s20 = sphi %s1133_s20, %s1446_s20   ;;  %s1080_s19 = sphi %s1131_s19, %s1445_s19   ;;  %s1076_s18 = sphi %s1129_s18, %s1444_s18  }
   0xc   : > { %s37_s26 = sadd.s32 1, %s1092_s22  ;;  %s102_s27 = sadd.s32 1, %s1084_s20 }
   0xd   : > { %p39_p0 = scmp.ge.s32.totalorder %s37_s26, 2  ;;  %p112_p1 = scmp.ne.s32.totalorder %s1084_s20, %s1080_s19 }
   0xe   : > { %p113_p2 = scmp.eq.s32.totalorder %s823_s24, 1  ;;  %p118_p3 = scmp.ne.s32.totalorder %s1080_s19, %s1076_s18 }
   0xf   : > { %s1450_s26 = smov (%p39_p0, %s37_s26), 0  ;;  %p119_p5 = scmp.eq.s32.totalorder %s1416_s25, 1 }
  0x10   : > { %p1171_p4 = por %p113_p2, %p112_p1  ;;  %s97_s29 = ssub.s32 %s1092_s22, %s1450_s26 }
  0x11   : > { %p827_p6 = scmp.ge.s32.totalorder %s1096_s23, 1  ;;  %p100_p7 = scmp.eq.s32.totalorder %s97_s29, 0 }
  0x12   : > { %p1180_p8 = por %p119_p5, %p118_p3  ;;  %p247_p9 = scmp.lt.s32.totalorder %s1096_s23, 3 }
  0x13   : > { %s1186_s6 = scalar_select %p100_p7, %s1084_s20, %s102_s27  }
  0x14   : > { %p248_p10 = pnand %p827_p6, %p247_p9 }
  0x16   : > { %251 = sbr.rel (%p248_p10) target bundleno = 303 (0x12f), region = 28 }
  0x1b   : > { %p304_p11 = scmp.lt.s32.totalorder %s1088_s21, 1  ;;  %s1425_s0 = sld [smem:[#allocation14_spill]]  ;;  %vm400_vm0 = vcmask 1043456   ;;  %vm497_vm14 = vcmask 1040384  }
  0x1c   : > { %s1428_s1 = sld [smem:[#allocation15_spill]]  ;;  %s1250_s15 = sand.u32 1, %s1080_s19  }
  0x1d   : > { %s1190_s7 = scalar_select %p304_p11, %s1088_s21, 1 }
  0x1e   : > { %s1253_s16 = sshll.u32 %s1250_s15, 1  ;;  %s844_s17 = sshll.u32 %s1088_s21, 1 }
  0x1f   : > { %s849_s8 = sshll.u32 %s1190_s7, 5  ;;  %s1258_s27 = sand.u32 1, %s823_s24  }
  0x20   : > { %s288_s9 = scalar_lea.vmem [#allocation5], %s1253_s16  ;;  %s580_s13 = scalar_lea.hbm %s1412_s2, %s844_s17 }
  0x21   : > { %s1198_s11 = scalar_lea.vmem %s1425_s0, %s849_s8  ;;  %s1264_s10 = sshll.u32 %s288_s9, 4  ;;  %s599_s10 = int_to_ptr.vmem [resolvable:$true] %s1264_s10 }
  0x22   : > { %v329_v0 = vld [vmem:[%s1198_s11] sm:$0xe0]  ;;  %v330_v1 = vld [vmem:[%s1198_s11 + $0x8] sm:$0xe0]  ;;  %v331_v2 = vld [vmem:[%s1198_s11 + $0x10] sm:$0x1]  ;;  %s1216_s14 = scalar_lea.vmem %s1428_s1, %s849_s8  ;;  %s596_s8 = scalar_lea.hbm %s1413_s3, %s844_s17 }
  0x23   : > { %v332_v3 = vld [vmem:[%s1198_s11 + $0x18] sm:$0x1]  ;;  %v326_v4 = vld [vmem:[%s1198_s11] ss:$8 sm:$0x3]  ;;  %s612_s0 = scalar_lea.hbm %s1414_s4, %s844_s17  ;;  %s1273_s1 = sshll.u32 %s596_s8, 4  ;;  %s601_s1 = int_to_ptr.hbm [resolvable:$true] %s1273_s1 }
  0x24   : > { %v340_v5 = vmul.f32 1.442695, %v329_v0  ;;  %v342_v6 = vmul.f32 1.442695, %v330_v1  ;;  %v344_v7 = vmul.f32 1.442695, %v331_v2 }
  0x25   : > { %v346_v8 = vmul.f32 1.442695, %v332_v3  ;;  %v839_v9 = vmul.f32 -1.442695, %v326_v4  ;;  %v327_v49 = vld [vmem:[%s1198_s11] sm:$0x1e] }
  0x26   : > { %912 = vpow2.f32 %v340_v5  ;;  %v336_v50 = vld [vmem:[%s1216_s14] sm:$0x1e]  ;;  %v328_v61 = vld [vmem:[%s1198_s11 + $0x8] sm:$0x1e]  ;;  %s1418_s24 = scalar_lea.vmem [#allocation2], %s1253_s16  ;;  %s1280_s7 = sshll.u32 %s580_s13, 4  ;;  %s585_s7 = int_to_ptr.hbm [resolvable:$true] %s1280_s7 }
  0x27   : > { %914 = vpow2.f32 %v342_v6  ;;  %v337_v62 = vld [vmem:[%s1216_s14 + $0x8] sm:$0x1e]  ;;  %v394_v63 = vsub.f32 %v327_v49, %v336_v50  ;;  %s1278_s29 = sshll.u32 %s1418_s24, 4  ;;  %s1287_s25 = sshll.u32 %s612_s0, 4  ;;  %s617_s25 = int_to_ptr.hbm [resolvable:$true] %s1287_s25 }
  0x28   : > { %916 = vpow2.f32 %v344_v7  ;;  %1433 = sst [smem:[#allocation12_spill]] %s1278_s29  ;;  %s558_s17 = scalar_lea.sflag [#allocation6], %s1258_s27 }
  0x29   : > { %918 = vpow2.f32 %v346_v8  ;;  %s954_s8 = sshra.s32 %s601_s1, 4  ;;  %s955_s8 = int_to_ptr.hbm [resolvable:$true] %s954_s8 }
  0x2a   : > { %920 = vpow2.f32 %v839_v9  ;;  %s956_s0 = scalar_lea.hbm %s955_s8, 2  ;;  %p961_p1 = scmp.lt.s32.totalorder %s955_s8, %s1413_s3 }
  0x2b   : > { %p957_p12 = scmp.ne.s32.totalorder %s955_s8, %s956_s0 }
  0x2c   : > { %v913_v10 = vpop.eup %912 }
  0x2d   : > { %v915_v11 = vpop.eup %914  ;;  %v348_v12 = vmax.f32 %v913_v10, 0.01  ;;  %p958_p13 = pnand %p957_p12, %p1171_p4 }
  0x2e   : > { %v917_v13 = vpop.eup %916  ;;  %v349_v14 = vmax.f32 %v915_v11, 0.01  ;;  %v395_v11 = vsub.f32 %v328_v61, %v337_v62 }
  0x2f   : > { %v919_v15 = vpop.eup %918  ;;  %v350_v16 = vmax.f32 %v917_v13, 0.01  ;;  %v352_v17 = vmin.f32 %v348_v12, 10.0  ;;  %p959_p0 = pneg %p958_p13 }
  0x30   : > { %v921_v18 = vpop.eup %920  ;;  %v351_v19 = vmax.f32 %v919_v15, 0.01  ;;  %v353_v20 = vmin.f32 %v349_v14, 10.0 }
  0x31   : > { %v354_v21 = vmin.f32 %v350_v16, 10.0  ;;  %v362_v22 = vadd.f32 1.0, %v921_v18  ;;  %v390_v23 = vadd.f32 1e-06, %v352_v17 }
  0x32   : > { %v355_v24 = vmin.f32 %v351_v19, 10.0  ;;  %v391_v25 = vadd.f32 1e-06, %v353_v20 }
  0x33   : > { %922 = vrcp.f32 %v362_v22  ;;  %v392_v26 = vadd.f32 1e-06, %v354_v21  ;;  %v401_v28 = vrot.slane %v390_v23, 4  ;;  %vm368_vm1 = vweird.f32 %v362_v22 }
  0x34   : > { %v393_v27 = vadd.f32 1e-06, %v355_v24  ;;  %v404_v29 = vrot.slane %v391_v25, 4  ;;  %924 = vlog2.f32 %v390_v23  ;;  %v372_v37 = vand.u32 2147483647, %v362_v22 }
  0x35   : > { %v402_v30 = vrot.slane %v392_v26, 4  ;;  %v374_v38 = vand.u32 2147483648, %v362_v22 }
  0x36   : > { %v405_v31 = vrot.slane %v393_v27, 4  ;;  %vm1220_vm4 = vcmp.eq.f32.partialorder %v372_v37, 8.507059e+37 }
  0x37   : > { %v403_v32 = vsel %vm400_vm0, %v401_v28, %v402_v30  ;;  %v375_v52 = vor.u32 1.1754944e-38, %v374_v38 }
  0x38   : > { %v406_v33 = vsel %vm400_vm0, %v404_v29, %v405_v31  ;;  %926 = vrcp.f32 %v403_v32  ;;  %v418_v46 = vand.u32 2147483647, %v403_v32  ;;  %v420_v47 = vand.u32 2147483648, %v403_v32 }
  0x39   : > { %v923_v34 = vpop.eup %922  ;;  %928 = vrcp.f32 %v406_v33  ;;  %vm414_vm5 = vweird.f32 %v403_v32  ;;  %v435_v57 = vand.u32 2147483648, %v406_v33  ;;  %vm429_vm7 = vweird.f32 %v406_v33 }
  0x3a   : > { %v364_v35 = vmul.f32 %v923_v34, %v362_v22  ;;  %930 = vlog2.f32 %v391_v25  ;;  %vm369_vm2 = vweird.f32 %v923_v34  ;;  %v925_v39 = vpop.eup %924  ;;  %v433_v60 = vand.u32 2147483647, %v406_v33 }
  0x3b   : > { %932 = vlog2.f32 %v392_v26  ;;  %vm1207_vm3 = vmor %vm368_vm1, %vm369_vm2  ;;  %vm1228_vm9 = vcmp.eq.f32.partialorder %v418_v46, 8.507059e+37  ;;  %v421_v2 = vor.u32 1.1754944e-38, %v420_v47  ;;  %v444_v5 = vmul.f32 0.6931472, %v925_v39 }
  0x3c   : > { %v365_v36 = vsub.f32 1.0, %v364_v35  ;;  %934 = vlog2.f32 %v393_v27  ;;  %v436_v8 = vor.u32 1.1754944e-38, %v435_v57  ;;  %vm434_vm12 = vcmp.eq.f32.partialorder %v433_v60, 8.507059e+37 }
  0x3d   : > { %v455_v17 = vrot.slane %v444_v5, 4 }
  0x3e   : > { %v366_v40 = vmul.f32 %v923_v34, %v365_v36  ;;  %v927_v41 = vpop.eup %926 }
  0x3f   : > { %v929_v43 = vpop.eup %928  ;;  %v410_v45 = vmul.f32 %v927_v41, %v403_v32  ;;  %vm415_vm6 = vweird.f32 %v927_v41 }
  0x40   : > { %v367_v44 = vadd.f32 %v923_v34, %v366_v40  ;;  %v931_v48 = vpop.eup %930  ;;  %v425_v53 = vmul.f32 %v929_v43, %v406_v33  ;;  %vm430_vm8 = vweird.f32 %v929_v43  ;;  %vm416_vm10 = vmor %vm414_vm5, %vm415_vm6 }
  0x41   : > { %v933_v54 = vpop.eup %932  ;;  %v411_v56 = vsub.f32 1.0, %v410_v45  ;;  %vm431_vm11 = vmor %vm429_vm7, %vm430_vm8  ;;  %v446_v9 = vmul.f32 0.6931472, %v931_v48 }
  0x42   : > { %v371_v55 = vsel %vm1207_vm3, %v923_v34, %v367_v44  ;;  %v935_v58 = vpop.eup %934  ;;  %v426_v59 = vsub.f32 1.0, %v425_v53  ;;  %v448_v6 = vmul.f32 0.6931472, %v933_v54 }
  0x43   : > { %v412_v0 = vmul.f32 %v927_v41, %v411_v56  ;;  %v376_v3 = vsel %vm1220_vm4, %v375_v52, %v371_v55  ;;  %v450_v10 = vmul.f32 0.6931472, %v935_v58  ;;  %v458_v21 = vrot.slane %v446_v9, 4 }
  0x44   : > { %v427_v4 = vmul.f32 %v929_v43, %v426_v59  ;;  %v381_v13 = vsub.f32 1.0, %v376_v3  ;;  %v456_v18 = vrot.slane %v448_v6, 4  ;;  %936 = vlog2.f32 %v376_v3 }
  0x45   : > { %v413_v7 = vadd.f32 %v927_v41, %v412_v0  ;;  %v459_v22 = vrot.slane %v450_v10, 4  ;;  %v1098_v52 = vmov 0.0   ;;  %v836_v0 = vld [vmem:[%s1198_s11 + $0x11] ss:$8 sm:$0x3]  ;;  %s1417_s11 = scalar_lea.vmem [#allocation7], %s1253_s16 }
  0x46   : > { %v428_v12 = vadd.f32 %v929_v43, %v427_v4  ;;  %938 = vlog2.f32 %v381_v13  ;;  %v457_v26 = vsel %vm400_vm0, %v455_v17, %v456_v18  ;;  %s1285_s12 = sshll.u32 %s1417_s11, 4  ;;  %s960_s11 = scalar_lea.hbm %s1413_s3, 4 }
  0x47   : > { %v417_v14 = vsel %vm416_vm10, %v927_v41, %v413_v7  ;;  %v460_v28 = vsel %vm400_vm0, %v458_v21, %v459_v22  ;;  %v335_v41 = vld [vmem:[%s1216_s14] ss:$8 sm:$0x3]  ;;  %1434 = sst [smem:[#allocation13_spill]] %s1285_s12  ;;  %p962_p2 = scmp.lt.s32.totalorder %s960_s11, %s956_s0 }
  0x48   : > { %v422_v15 = vsel %vm1228_vm9, %v421_v2, %v417_v14  ;;  %v432_v16 = vsel %vm431_vm11, %v929_v43, %v428_v12  ;;  %v386_v47 = vsub.f32 1.0, %v335_v41  ;;  %vm356_vm13 = vcmp.gt.f32.partialorder %v335_v41, 0.5  ;;  %v837_v2 = vld [vmem:[%s1216_s14 + $0x11] ss:$8 sm:$0x3] }
  0x49   : > { %v423_v19 = vmul.f32 %v422_v15, %v394_v63  ;;  %v437_v20 = vsel %vm434_vm12, %v436_v8, %v432_v16  ;;  %v838_v53 = vsel %vm356_vm13, 1.0, %v1098_v52  ;;  %v501_v6 = vsub.f32 %v836_v0, %v837_v2  ;;  %p963_p3 = por %p962_p2, %p961_p1 }
  0x4a   : > { %v438_v23 = vmul.f32 %v437_v20, %v395_v11  ;;  %v937_v31 = vpop.eup %936  ;;  %v488_v60 = vperm.slane %v838_v53, 0  ;;  %v489_v61 = vperm.slane %v838_v53, 1 }
  0x4b   : > { %v439_v24 = vmul.f32 0.5, %v423_v19  ;;  %v379_v37 = vmul.f32 0.6931472, %v937_v31  ;;  %v1245_v10 = vmul.f32 %v501_v6, %v501_v6  ;;  %p964_p5 = pnand %p963_p3, %p959_p0 }
  0x4c   : > { %v440_v25 = vmul.f32 0.5, %v438_v23  ;;  %v939_v33 = vpop.eup %938 }
  0x4d   : > { %v441_v27 = vmul.f32 %v439_v24, %v423_v19  ;;  %v383_v38 = vmul.f32 0.6931472, %v939_v33  ;;  %v380_v45 = vmax.f32 %v379_v37, -100.0  ;;  %v529_v15 = vperm.slane %v1245_v10, 0 }
  0x4e   : > { %v442_v29 = vmul.f32 %v440_v25, %v438_v23  ;;  %v530_v16 = vperm.slane %v1245_v10, 1 }
  0x4f   : > { %v463_v30 = vadd.f32 %v457_v26, %v441_v27  ;;  %v384_v46 = vmax.f32 %v383_v38, -100.0  ;;  %v385_v54 = vmul.f32 %v380_v45, %v335_v41  ;;  %v533_v18 = vsel %vm497_vm14, %v529_v15, 0.0 }
  0x50   : > { %v464_v32 = vadd.f32 %v460_v28, %v442_v29  ;;  %v534_v19 = vsel %vm497_vm14, %v530_v16, 0.0 }
  0x51   : > { %v467_v34 = vrot.slane %v463_v30, 1  ;;  %v387_v55 = vmul.f32 %v386_v47, %v384_v46  ;;  %v535_v20 = vadd.f32 %v534_v19, %v533_v18 }
  0x52   : > { %v468_v35 = vrot.slane %v464_v32, 1 }
  0x53   : > { %v471_v36 = vsel %vm400_vm0, %v467_v34, 0.0  ;;  %v388_v62 = vadd.f32 %v387_v55, %v385_v54 }
  0x54   : > { %v472_v39 = vrot.slane %v471_v36, 4  ;;  %v478_v40 = vsel %vm400_vm0, %v468_v35, 0.0  ;;  %v504_v35 = vlaneseq }
  0x55   : > { %v479_v42 = vrot.slane %v478_v40, 4  ;;  %v389_v5 = vsub.f32 0.0, %v388_v62 }
  0x56   : > { %v473_v43 = vadd.f32 %v472_v39, %v471_v36  ;;  %vm1290_vm15 = vcmp.lt.s32.totalorder %v504_v35, 256 }
  0x57   : > { %v480_v44 = vadd.f32 %v479_v42, %v478_v40 }
  0x58   : > { %v474_v48 = vrot.slane %v473_v43, 2 }
  0x59   : > { %v481_v49 = vrot.slane %v480_v44, 2 }
  0x5a   : > { %v475_v50 = vadd.f32 %v474_v48, %v473_v43 }
  0x5b   : > { %v482_v51 = vadd.f32 %v481_v49, %v480_v44 }
  0x5c   : > { %v476_v56 = vrot.slane %v475_v50, 1 }
  0x5d   : > { %v483_v57 = vrot.slane %v482_v51, 1 }
  0x5e   : > { %v477_v58 = vadd.f32 %v476_v56, %v475_v50 }
  0x5f   : > { %v484_v59 = vadd.f32 %v483_v57, %v482_v51 }
  0x60   : > { %v485_v63 = vadd.f32 3.675754, %v477_v58 }
  0x61   : > { %v486_v1 = vadd.f32 3.675754, %v484_v59 }
  0x62   : > { %v492_v3 = vmul.f32 %v488_v60, %v485_v63 }
  0x63   : > { %v493_v4 = vmul.f32 %v489_v61, %v486_v1 }
  0x65   : > { %v496_v7 = vrot.slane %v493_v4, 7 }
  0x67   : > { %v498_v8 = vsel %vm497_vm14, %v492_v3, %v496_v7 }
  0x68   : > { %v500_v9 = vadd.f32 %v498_v8, %v389_v5 }
  0x6a   : > { %v512_v11 = vperm.slane %v500_v9, 0  ;;  %v513_v12 = vperm.slane %v500_v9, 1  ;;  %v503_v37 = vadd.f32 %v1245_v10, %v500_v9  ;;  %509 = vst.msk [vmem:[%s288_s9] sm:$0x3] %vm1290_vm15, %v500_v9 }
  0x6c   : > { %v516_v13 = vsel %vm497_vm14, %v512_v11, 0.0  ;;  %v517_v14 = vsel %vm497_vm14, %v513_v12, 0.0 }
  0x6d   : > { %v518_v17 = vadd.f32 %v517_v14, %v516_v13 }
  0x6f   : > { %519 = vadd.xlane.f32.xlu0 %v518_v17 }
  0x77   : > { %536 = vadd.xlane.f32.xlu0 %v535_v20 }
  0xe2   : > { %v520_v21 = vpop.xlane.xlu0 %519 }
  0xe3   : > { %v521_v22 = vrot.slane %v520_v21, 4 }
  0xe5   : > { %v522_v23 = vadd.f32 %v521_v22, %v520_v21 }
  0xe7   : > { %v523_v24 = vrot.slane %v522_v23, 2 }
  0xe9   : > { %v524_v25 = vadd.f32 %v523_v24, %v522_v23 }
  0xea   : > { %v537_v26 = vpop.xlane.xlu0 %536 }
  0xeb   : > { %v538_v27 = vrot.slane %v537_v26, 4  ;;  %v525_v28 = vrot.slane %v524_v25, 1 }
  0xed   : > { %v539_v29 = vadd.f32 %v538_v27, %v537_v26  ;;  %v526_v30 = vadd.f32 %v525_v28, %v524_v25 }
  0xef   : > { %v540_v31 = vrot.slane %v539_v29, 2  ;;  %851 = vpush %v526_v30 }
  0xf1   : > { %v541_v32 = vadd.f32 %v540_v31, %v539_v29 }
  0xf3   : > { %v542_v33 = vrot.slane %v541_v32, 1 }
  0xf5   : > { %v543_v34 = vadd.f32 %v542_v33, %v541_v32 }
  0xf7   : > { %853 = vpush %v543_v34 }
  0xf8   : > { %967 = shalt.err (!%p964_p5)
}
  0xf9   : > { %856 = dma.vmem_to_hbm [thread:$0]  (%p1171_p4), %s599_s10, 32, %s601_s1, %s558_s17  }
  0xfa   : > { %s1437_s9 = scalar_lea.vmem [#allocation2], %s1253_s16  ;;  %s553_s24 = scalar_lea.sflag [#allocation3], %s1250_s15 }
  0xfb   : > { %508 = vst.msk [vmem:[%s1437_s9] sm:$0x3] %vm1290_vm15, %v503_v37  ;;  %s982_s29 = sshra.s32 %s585_s7, 4  ;;  %s988_s13 = scalar_lea.hbm %s1412_s2, 4  ;;  %s983_s29 = int_to_ptr.hbm [resolvable:$true] %s982_s29 }
  0xfc   : > { %s984_s11 = scalar_lea.hbm %s983_s29, 2  ;;  %p989_p10 = scmp.lt.s32.totalorder %s983_s29, %s1412_s2 }
  0xfd   : > { %p985_p6 = scmp.ne.s32.totalorder %s983_s29, %s984_s11  ;;  %p990_p11 = scmp.lt.s32.totalorder %s988_s13, %s984_s11 }
  0xff   : > { %p986_p7 = pnand %p985_p6, %p1171_p4  ;;  %p991_p12 = por %p990_p11, %p989_p10 }
 0x101   : > { %p987_p9 = pneg %p986_p7 }
 0x103   : > { %p992_p13 = pnand %p991_p12, %p987_p9 }
 0x105   : > { %995 = shalt.err (!%p992_p13)
}
 0x106   : > { %s1438_s1 = sld [smem:[#allocation12_spill]]  ;;  %s1440_s9 = scalar_lea.vmem [#allocation7], %s1253_s16 }
 0x107   : > { %510 = vst.msk [vmem:[%s1440_s9] sm:$0x3] %vm1290_vm15, %v1245_v10  ;;  %s1010_s12 = sshra.s32 %s617_s25, 4  ;;  %s1016_s0 = scalar_lea.hbm %s1414_s4, 4  ;;  %s1011_s12 = int_to_ptr.hbm [resolvable:$true] %s1010_s12 }
 0x108   : > { %s1012_s29 = scalar_lea.hbm %s1011_s12, 2  ;;  %p1017_p3 = scmp.lt.s32.totalorder %s1011_s12, %s1414_s4 }
 0x109   : > { %p1013_p0 = scmp.ne.s32.totalorder %s1011_s12, %s1012_s29  ;;  %p1018_p5 = scmp.lt.s32.totalorder %s1016_s0, %s1012_s29 }
 0x10b   : > { %p1014_p1 = pnand %p1013_p0, %p1171_p4  ;;  %p1019_p6 = por %p1018_p5, %p1017_p3 }
 0x10c   : > { %s1439_s10 = int_to_ptr.vmem [resolvable:$true] %s1438_s1 }
 0x10d   : > { %855 = dma.vmem_to_hbm [thread:$0]  (%p1171_p4), %s1439_s10, 32, %s585_s7, %s553_s24  }
 0x10e   : > { %p1015_p2 = pneg %p1014_p1 }
 0x110   : > { %p1020_p7 = pnand %p1019_p6, %p1015_p2 }
 0x112   : > { %1023 = shalt.err (!%p1020_p7)
}
 0x113   : > { %s1441_s16 = sld [smem:[#allocation13_spill]]  ;;  %s831_s24 = sshll.u32 %s1250_s15, 7 }
 0x114   : > { %s302_s1 = scalar_lea.smem [#allocation8], %s831_s24  ;;  %s626_s11 = scalar_lea.hbm %s1415_s5, %s1088_s21 }
 0x115   : > { %s545_s10 = scalar_lea.smem %s302_s1, 1 [#allocation8]  ;;  %s547_s8 = scalar_lea.smem %s302_s1, 2 [#allocation8] }
 0x116   : > { %s628_s27 = sshll.u32 %s626_s11, 4  ;;  %s568_s14 = scalar_lea.sflag [#allocation4], %s1250_s15  ;;  %s629_s27 = int_to_ptr.hbm [resolvable:$true] %s628_s27 }
 0x117   : > { %s1030_s24 = scalar_lea.hbm %s1415_s5, 2 }
 0x119   : > { %s1442_s7 = int_to_ptr.vmem [resolvable:$true] %s1441_s16  ;;  %s1024_s16 = sshra.s32 %s629_s27, 4  ;;  %s1025_s16 = int_to_ptr.hbm [resolvable:$true] %s1024_s16 }
 0x11a   : > { %857 = dma.vmem_to_hbm [thread:$0]  (%p1171_p4), %s1442_s7, 32, %s617_s25, %s558_s17  }
 0x11b   : > { %s1026_s25 = scalar_lea.hbm %s1025_s16, 1  ;;  %p1031_p12 = scmp.lt.s32.totalorder %s1025_s16, %s1415_s5 }
 0x11c   : > { %p1027_p9 = scmp.ne.s32.totalorder %s1025_s16, %s1026_s25  ;;  %p1032_p13 = scmp.lt.s32.totalorder %s1030_s24, %s1026_s25 }
 0x11e   : > { %p1028_p10 = pnand %p1027_p9, %p1171_p4  ;;  %p1033_p0 = por %p1032_p13, %p1031_p12 }
 0x120   : > { %s852_s9 = spop %851  ;;  %p1029_p11 = pneg %p1028_p10 }
 0x121   : > { %546 = sst [smem:[%s545_s10]] %s852_s9 }
 0x122   : > { %p1034_p1 = pnand %p1033_p0, %p1029_p11 }
 0x128   : > { %s854_s0 = spop %853 }
 0x129   : > { %548 = sst [smem:[%s547_s8]] %s854_s0 }
 0x12a   : > { %s549_s13 = sadd.f32 %s854_s0, %s852_s9 }
 0x12c   : > { %551 = sst [smem:[%s302_s1]] %s549_s13 }
 0x12d   : > { %1037 = shalt.err (!%p1034_p1)
}
 0x12e   : > { %858 = dma.smem_to_hbm (%p1171_p4), %s302_s1, 16, %s629_s27, %s568_s14  }
 0x12f PF: > { %p848_p2 = scmp.lt.s32.totalorder %s1096_s23, 2 }
 0x130   : > { %s640_s15 = sand.u32 (!%p848_p2), 1, %s1076_s18  }
 0x131   : > { %635 = sbr.rel (%p848_p2) target bundleno = 319 (0x13f), region = 48  ;;  %s641_s9 = scalar_lea.sflag (!%p848_p2), [#allocation3], %s640_s15 }
 0x136   : > { %1063 = dma.done.wait (%p1180_p8), %s641_s9, 32  }
 0x137   : > { %1065 = vsyncadd (%p1180_p8), %s641_s9, 4294967264  ;;  %s1443_s12 = sadd.s32 4294967294, %s1096_s23  }
 0x138   : > { %s650_s29 = sand.u32 1, %s1443_s12  }
 0x139   : > { %s651_s11 = scalar_lea.sflag [#allocation6], %s650_s29 }
 0x13a   : > { %1067 = dma.done.wait (%p1180_p8), %s651_s11, 64  }
 0x13b   : > { %1069 = vsyncadd (%p1180_p8), %s651_s11, 4294967232  ;;  %s671_s28 = scalar_lea.sflag [#allocation4], %s640_s15 }
 0x13c   : > { %1071 = dma.done.wait (%p1180_p8), %s671_s28, 16  }
 0x13d   : > { %1073 = vsyncadd (%p1180_p8), %s671_s28, 4294967280 }
 0x13e   : > { %677 = sfence }
 0x13f PF: > { %s25_s23 = sadd.s32 1, %s1096_s23   ;;  %s1444_s18 = smov %s1080_s19 }
 0x140   : > { %p22_p4 = scmp.ge.s32.totalorder %s25_s23, 4   ;;  %s1445_s19 = smov %s1084_s20 }
 0x141   : > { %s1446_s20 = smov %s1186_s6  ;;  %s1447_s21 = smov %s1092_s22 }
 0x142   : > { %s1448_s22 = smov %s1450_s26  ;;  %24 = sbr.rel (!%p22_p4) target bundleno = 11 (0xb), region = 120 }
 0x147   :  { %678 = vsyncpa [#allocation3], 1 }
 0x148   :  { %680 = vsyncpa [#allocation3 + $0x1], 1 }
 0x149   :  { %681 = vsyncpa [#allocation6], 1 }
 0x14a   :  { %683 = vsyncpa [#allocation6 + $0x1], 1 }
 0x14b   :  { %684 = vsyncpa [#allocation4], 1 }
 0x14c   :  { %686 = vsyncpa [#allocation4 + $0x1], 1 }

</bundles_post_ra>
